<compile_context>
chip_gen: v7x
topology: tpu7x:2x2x1
jax: 0.10.0
libtpu: 0.0.40
codegen_flags: <defaults>
</compile_context>

<pallas_src>
import functools

import jax
import jax.numpy as jnp
import numpy as np
from jax.experimental import pallas as pl
from jax.experimental.pallas import tpu as pltpu


def _offset_loss_kernel(avg_ref, w_ref, side_ref, est_ref, loss_ref, *, P, alpha, beta):
    avg = avg_ref[...]                                        # (bt, P^3) f32
    # softmin(x) = softmax(-x); with m = row-min, exp(m - x) is the unnormalized numerator.
    m = jnp.min(avg, axis=1, keepdims=True)
    ex = jnp.exp(m - avg)                                     # (bt, P^3), values in (0, 1]

    # One MXU matmul on the UNNORMALIZED numerator:
    #   columns 0:3P   -> marginal sums of the (P,P,P) cube (x | y | t)
    #   columns 3P:3P+3-> coordinate expectations (d_x, d_y, d_t per cell)
    #   column  3P+3   -> ones => softmax denominator
    mw = jnp.dot(ex, w_ref[...], preferred_element_type=jnp.float32)   # (bt, 3P+4)
    inv = pl.reciprocal(mw[:, 3 * P + 3:3 * P + 4])           # exact 1/denom, (bt, 1)
    marg = mw[:, :3 * P] * inv                                # (bt, 3P)
    est = mw[:, 3 * P:3 * P + 3] * inv                        # (bt, 3)

    gt = side_ref[:, 0:3]                                     # (bt, 3)
    onehot = side_ref[:, 3:3 + 3 * P]                         # (bt, 3P)

    # regression term: alpha * (dx^2 + dy^2) + dt^2   (scalar weights only — no captured array)
    diff = gt - est
    d2 = diff * diff
    off = alpha * (d2[:, 0:1] + d2[:, 1:2]) + d2[:, 2:3]      # (bt, 1)

    # classification term: NLL at the precomputed target bins
    logp = jnp.log(jnp.maximum(marg, 1e-8))                   # (bt, 3P)
    cls = -jnp.sum(onehot * logp, axis=1, keepdims=True)      # (bt, 1)

    est_ref[...] = est
    loss_ref[...] = off + beta * cls


@functools.lru_cache(maxsize=8)
def _weight_table(P, d_bytes):
    """Constant (P^3, 3P+4) f32 table: marginal indicators | per-cell coords | ones."""
    d = np.frombuffer(d_bytes, dtype=np.float32).reshape(3, P).copy()
    n = np.arange(P ** 3)
    ix, iy, it = n // (P * P), (n // P) % P, n % P
    W = np.zeros((P ** 3, 3 * P + 4), np.float32)
    W[n, ix] = 1.0
    W[n, P + iy] = 1.0
    W[n, 2 * P + it] = 1.0
    W[:, 3 * P + 0] = d[0, ix]
    W[:, 3 * P + 1] = d[1, iy]
    W[:, 3 * P + 2] = d[2, it]
    W[:, 3 * P + 3] = 1.0
    return jnp.asarray(W)


def offset_loss_forward_batched(gt_xyt, avg_vector, d_xyt, alpha, beta, block_b=None):
    """gt_xyt: (B, 3), avg_vector: (B, P^3), d_xyt: (3, P).  Returns (loss (B,), est (B, 3))."""
    gt = jnp.asarray(gt_xyt, jnp.float32)
    avg = jnp.asarray(avg_vector, jnp.float32)
    B, P3 = avg.shape
    P = d_xyt.shape[1]
    assert P3 == P ** 3

    # NOTE: d_xyt must be a concrete (non-traced) array — it parameterizes the constant table.
    d_np = np.asarray(d_xyt, dtype=np.float32)
    W = _weight_table(P, d_np.tobytes())                      # (P^3, 3P+4), cached per (P, grid)

    # Target one-hot (independent of avg_vector); argmin == first min index, like torch .nonzero()[0,1].
    delta = jnp.abs(gt[:, :, None] - jnp.asarray(d_np)[None, :, :])   # (B, 3, P)
    tgt = jnp.argmin(delta, axis=-1)                                  # (B, 3)
    onehot = jax.nn.one_hot(tgt, P, dtype=jnp.float32).reshape(B, 3 * P)
    side = jnp.concatenate([gt, onehot], axis=1)                      # (B, 3P+3): one side input

    # ---- batch tiling: VMEM/P-aware cap, multiple of 8 rows, >=2 grid steps when B > 16 ----
    if block_b is None:
        block_b = max(8, min(2048, (2 * 1024 * 1024) // (P3 * 4)))   # ~2 MiB avg tile / buffer
    if B <= 16:
        bt = B                                        # single block; block == full batch dim
    else:
        half = ((pl.cdiv(B, 2) + 7) // 8) * 8         # split so both v7x TCs get work
        bt = min(block_b, half)
        bt = max(8, (bt // 8) * 8)                    # sublane-aligned rows
    grid = pl.cdiv(B, bt)                             # last block may be partial: OOB rows are
                                                      # row-contained garbage, masked on write.

    kernel = functools.partial(_offset_loss_kernel, P=P,
                               alpha=float(alpha), beta=float(beta))

    # VMEM budget: avg double buffer + resident W (lane-padded) + small side/output buffers.
    vmem_bytes = (2 * bt * P3 * 4) + (2 * P3 * 128 * 4) + (6 * bt * 128 * 4) + (2 << 20)
    vmem_limit = int(min(max(vmem_bytes, 4 << 20), 100 * 1024 * 1024))

    est, loss = pl.pallas_call(
        kernel,
        out_shape=(jax.ShapeDtypeStruct((B, 3), jnp.float32),
                   jax.ShapeDtypeStruct((B, 1), jnp.float32)),
        grid=(grid,),
        in_specs=[
            pl.BlockSpec((bt, P3), lambda i: (i, 0)),              # logits, tiled over batch
            pl.BlockSpec((P3, 3 * P + 4), lambda i: (0, 0)),       # W: resident constant
            pl.BlockSpec((bt, 3 * P + 3), lambda i: (i, 0)),       # [gt | onehot]
        ],
        out_specs=(pl.BlockSpec((bt, 3), lambda i: (i, 0)),
                   pl.BlockSpec((bt, 1), lambda i: (i, 0))),
        compiler_params=pltpu.CompilerParams(
            dimension_semantics=("parallel",),
            vmem_limit_bytes=vmem_limit),
    )(avg, W, side)

    return loss[:, 0], est


def offset_loss_forward(gt_xyt, avg_vector, d_xyt, alpha, beta):
    """Single-sample API matching the PyTorch module: gt_xyt (3,), avg_vector (P^3,)."""
    loss, est = offset_loss_forward_batched(gt_xyt[None, :], avg_vector[None, :],
                                            d_xyt, alpha, beta)
    return loss[0], est[0]


def _reference(gt_xyt, avg_vector, d_xyt, alpha, beta):
    """Pure-JAX reference matching the PyTorch forward."""
    P = d_xyt.shape[1]
    v = -avg_vector
    v = v - jnp.max(v)
    p = jnp.exp(v)
    p = p / jnp.sum(p)
    dp = p.reshape(P, P, P)
    sx = dp.sum(axis=(1, 2))
    sy = dp.sum(axis=(0, 2))
    st = dp.sum(axis=(0, 1))
    est = jnp.array([jnp.dot(d_xyt[0], sx),
                     jnp.dot(d_xyt[1], sy),
                     jnp.dot(d_xyt[2], st)])
    diff = gt_xyt - est
    off = alpha * (jnp.abs(diff[0]) ** 2 + jnp.abs(diff[1]) ** 2) + jnp.abs(diff[2]) ** 2
    inp = jnp.log(jnp.clip(jnp.stack([sx, sy, st]), 1e-8, None))
    tx = jnp.argmin(jnp.abs(gt_xyt[0] - d_xyt[0]))
    ty = jnp.argmin(jnp.abs(gt_xyt[1] - d_xyt[1]))
    tt = jnp.argmin(jnp.abs(gt_xyt[2] - d_xyt[2]))
    cls = -(inp[0, tx] + inp[1, ty] + inp[2, tt])
    return off + beta * cls, est


if __name__ == "__main__":
    # deterministic "module params" (shapes from __init__: d_xyt is (3, P_portion))
    P_portion = 8
    alpha, beta = 1.5, 0.5
    d_xyt = jnp.stack([jnp.linspace(-1.0, 1.0, P_portion),
                       jnp.linspace(-2.0, 2.0, P_portion),
                       jnp.linspace(-0.5, 0.5, P_portion)]).astype(jnp.float32)
    # x_kedu / y_kedu / t_kedu from __init__ are unused in forward — omitted.

    key = jax.random.PRNGKey(0)
    k1, k2, k3, k4 = jax.random.split(key, 4)

    # ---- single-sample path (matches the PyTorch module API) ----
    gt_xyt = jax.random.uniform(k1, (3,), minval=-1.0, maxval=1.0).astype(jnp.float32)
    avg_vector = jax.random.normal(k2, (P_portion ** 3,), dtype=jnp.float32)

    loss, est = offset_loss_forward(gt_xyt, avg_vector, d_xyt, alpha, beta)
    jax.block_until_ready((loss, est))

    ref_loss, ref_est = _reference(gt_xyt, avg_vector, d_xyt, alpha, beta)
    assert np.allclose(np.asarray(loss), np.asarray(ref_loss), rtol=1e-5, atol=1e-5), \
        (loss, ref_loss)
    assert np.allclose(np.asarray(est), np.asarray(ref_est), rtol=1e-5, atol=1e-5), \
        (est, ref_est)

    # ---- batched path: multi-step grid with a PARTIAL last block (B=20, tile=8, no padding) ----
    B = 20
    gts = jax.random.uniform(k3, (B, 3), minval=-1.0, maxval=1.0).astype(jnp.float32)
    avgs = jax.random.normal(k4, (B, P_portion ** 3), dtype=jnp.float32)

    b_loss, b_est = offset_loss_forward_batched(gts, avgs, d_xyt, alpha, beta, block_b=8)
    jax.block_until_ready((b_loss, b_est))

    ref_b_loss, ref_b_est = jax.vmap(
        lambda g, a: _reference(g, a, d_xyt, alpha, beta))(gts, avgs)
    assert np.allclose(np.asarray(b_loss), np.asarray(ref_b_loss), rtol=1e-5, atol=1e-5), \
        (b_loss, ref_b_loss)
    assert np.allclose(np.asarray(b_est), np.asarray(ref_b_est), rtol=1e-5, atol=1e-5), \
        (b_est, ref_b_est)

    # ---- batched path with default (VMEM-aware) tiling: B=20 -> bt=16, grid=2 ----
    d_loss, d_est = offset_loss_forward_batched(gts, avgs, d_xyt, alpha, beta)
    jax.block_until_ready((d_loss, d_est))
    assert np.allclose(np.asarray(d_loss), np.asarray(ref_b_loss), rtol=1e-5, atol=1e-5)
    assert np.allclose(np.asarray(d_est), np.asarray(ref_b_est), rtol=1e-5, atol=1e-5)

    print("KERNEL_OK")
</pallas_src>

<mosaic_0001>
module attributes {stable_mosaic.version = 11 : i64} {
  func.func @_offset_loss_kernel(%arg0: i32, %arg1: memref<1x512xf32, #tpu.memory_space<vmem>>, %arg2: memref<512x28xf32, #tpu.memory_space<vmem>>, %arg3: memref<1x27xf32, #tpu.memory_space<vmem>>, %arg4: memref<1x3xf32, #tpu.memory_space<vmem>>, %arg5: memref<1x1xf32, #tpu.memory_space<vmem>>) attributes {dimension_semantics = [#tpu.dimension_semantics<parallel>], iteration_bounds = array<i64: 1>, scalar_prefetch = 0 : i64, scratch_operands = 0 : i64, tpu.core_type = #tpu.core_type<tc>, window_params = [{transform_indices = @transform_0, window_bounds = array<i64: 1, 512>}, {pipeline_mode = #tpu.pipeline_mode<synchronous>, transform_indices = @transform_1, window_bounds = array<i64: 512, 28>}, {transform_indices = @transform_2, window_bounds = array<i64: 1, 27>}, {transform_indices = @transform_3, window_bounds = array<i64: 1, 3>}, {transform_indices = @transform_4, window_bounds = array<i64: 1, 1>}]} {
    %c0 = arith.constant 0 : index
    %c0_0 = arith.constant 0 : index
    %0 = vector.load %arg1[%c0, %c0_0] : memref<1x512xf32, #tpu.memory_space<vmem>>, vector<1x512xf32>
    %cst = arith.constant dense<0x7F800000> : vector<1xf32>
    %1 = vector.multi_reduction <minimumf>, %0, %cst [1] : vector<1x512xf32> to vector<1xf32>
    %2 = vector.shape_cast %1 : vector<1xf32> to vector<1x1xf32>
    %3 = vector.broadcast %2 : vector<1x1xf32> to vector<1x512xf32>
    %4 = arith.subf %3, %0 : vector<1x512xf32>
    %5 = math.exp %4 : vector<1x512xf32>
    %c0_1 = arith.constant 0 : index
    %c0_2 = arith.constant 0 : index
    %6 = vector.load %arg2[%c0_1, %c0_2] : memref<512x28xf32, #tpu.memory_space<vmem>>, vector<512x28xf32>
    %cst_3 = arith.constant dense<0.000000e+00> : vector<1x28xf32>
    %7 = tpu.matmul %5, %6, %cst_3 {dimension_numbers = #tpu.dot_dimension_numbers<[1], [0], [0], [1], [0, 0, 1, 1], [], []>} : vector<1x512xf32>, vector<512x28xf32>, vector<1x28xf32> -> vector<1x28xf32>
    %8 = vector.extract_strided_slice %7 {offsets = [0, 27], sizes = [1, 1], strides = [1, 1]} : vector<1x28xf32> to vector<1x1xf32>
    %9 = tpu.reciprocal %8 : vector<1x1xf32> -> vector<1x1xf32>
    %10 = vector.extract_strided_slice %7 {offsets = [0, 0], sizes = [1, 24], strides = [1, 1]} : vector<1x28xf32> to vector<1x24xf32>
    %11 = vector.broadcast %9 : vector<1x1xf32> to vector<1x24xf32>
    %12 = arith.mulf %10, %11 : vector<1x24xf32>
    %13 = vector.extract_strided_slice %7 {offsets = [0, 24], sizes = [1, 3], strides = [1, 1]} : vector<1x28xf32> to vector<1x3xf32>
    %14 = vector.broadcast %9 : vector<1x1xf32> to vector<1x3xf32>
    %15 = arith.mulf %13, %14 : vector<1x3xf32>
    %c0_4 = arith.constant 0 : index
    %c0_5 = arith.constant 0 : index
    %16 = vector.load %arg3[%c0_4, %c0_5] : memref<1x27xf32, #tpu.memory_space<vmem>>, vector<1x3xf32>
    %c0_6 = arith.constant 0 : index
    %c3 = arith.constant 3 : index
    %17 = vector.load %arg3[%c0_6, %c3] : memref<1x27xf32, #tpu.memory_space<vmem>>, vector<1x24xf32>
    %18 = arith.subf %16, %15 : vector<1x3xf32>
    %19 = arith.mulf %18, %18 : vector<1x3xf32>
    %20 = vector.extract_strided_slice %19 {offsets = [0, 0], sizes = [1, 1], strides = [1, 1]} : vector<1x3xf32> to vector<1x1xf32>
    %21 = vector.extract_strided_slice %19 {offsets = [0, 1], sizes = [1, 1], strides = [1, 1]} : vector<1x3xf32> to vector<1x1xf32>
    %22 = arith.addf %20, %21 : vector<1x1xf32>
    %cst_7 = arith.constant 1.500000e+00 : f32
    %23 = vector.broadcast %cst_7 : f32 to vector<1x1xf32>
    %24 = arith.mulf %23, %22 : vector<1x1xf32>
    %25 = vector.extract_strided_slice %19 {offsets = [0, 2], sizes = [1, 1], strides = [1, 1]} : vector<1x3xf32> to vector<1x1xf32>
    %26 = arith.addf %24, %25 : vector<1x1xf32>
    %cst_8 = arith.constant 9.99999993E-9 : f32
    %27 = vector.broadcast %cst_8 : f32 to vector<1x24xf32>
    %28 = arith.maximumf %12, %27 : vector<1x24xf32>
    %29 = math.log %28 : vector<1x24xf32>
    %30 = arith.mulf %17, %29 : vector<1x24xf32>
    %cst_9 = arith.constant dense<0.000000e+00> : vector<1xf32>
    %31 = vector.multi_reduction <add>, %30, %cst_9 [1] : vector<1x24xf32> to vector<1xf32>
    %32 = vector.shape_cast %31 : vector<1xf32> to vector<1x1xf32>
    %cst_10 = arith.constant 0.000000e+00 : f32
    %33 = vector.broadcast %cst_10 : f32 to vector<1x1xf32>
    %34 = arith.subf %33, %32 : vector<1x1xf32>
    %c0_11 = arith.constant 0 : index
    %c0_12 = arith.constant 0 : index
    %35 = vector.load %arg4[%c0_11, %c0_12] : memref<1x3xf32, #tpu.memory_space<vmem>>, vector<1x3xf32>
    tpu.vector_store %arg4[%c0_11, %c0_12], %15 {strides = array<i32>} : memref<1x3xf32, #tpu.memory_space<vmem>>, vector<1x3xf32>,
    %cst_13 = arith.constant 5.000000e-01 : f32
    %36 = vector.broadcast %cst_13 : f32 to vector<1x1xf32>
    %37 = arith.mulf %36, %34 : vector<1x1xf32>
    %38 = arith.addf %26, %37 : vector<1x1xf32>
    %c0_14 = arith.constant 0 : index
    %c0_15 = arith.constant 0 : index
    %39 = vector.load %arg5[%c0_14, %c0_15] : memref<1x1xf32, #tpu.memory_space<vmem>>, vector<1x1xf32>
    tpu.vector_store %arg5[%c0_14, %c0_15], %38 {strides = array<i32>} : memref<1x1xf32, #tpu.memory_space<vmem>>, vector<1x1xf32>,
    return
  }
  func.func @transform_0(%arg0: i32) -> (i32, i32) {
    %c0_i32 = arith.constant 0 : i32
    %c0_i32_0 = arith.constant 0 : i32
    return %arg0, %c0_i32 : i32, i32
  }
  func.func @transform_1(%arg0: i32) -> (i32, i32) {
    %c0_i32 = arith.constant 0 : i32
    %c0_i32_0 = arith.constant 0 : i32
    %c0_i32_1 = arith.constant 0 : i32
    return %c0_i32, %c0_i32_0 : i32, i32
  }
  func.func @transform_2(%arg0: i32) -> (i32, i32) {
    %c0_i32 = arith.constant 0 : i32
    %c0_i32_0 = arith.constant 0 : i32
    return %arg0, %c0_i32 : i32, i32
  }
  func.func @transform_3(%arg0: i32) -> (i32, i32) {
    %c0_i32 = arith.constant 0 : i32
    %c0_i32_0 = arith.constant 0 : i32
    return %arg0, %c0_i32 : i32, i32
  }
  func.func @transform_4(%arg0: i32) -> (i32, i32) {
    %c0_i32 = arith.constant 0 : i32
    %c0_i32_0 = arith.constant 0 : i32
    return %arg0, %c0_i32 : i32, i32
  }
}

</mosaic_0001>

<bundles_post_ra>
// kernel: tpu_custom_call.1
= control target key start
LH: loop header
LB: loop body
LE: loop exit
PB: predicated region body
PF: predicated region fallthrough
CT: control target
= control target key end

     0   :  { %10 = vsyncpa [#allocation3], 0  ;;  %v20_v0 = vlaneseq  ;;  %vm40_vm0 = vcmask 1040384   ;;  %s867_s0 = inlined_call_operand.vmem [shape: f32[1,512], index: 0, kind: input, shape index: {}]   ;;  %s868_s1 = inlined_call_operand.vmem [shape: f32[512,28], index: 1, kind: input, shape index: {}]   ;;  %s869_s2 = inlined_call_operand.vmem [shape: f32[1,27], index: 2, kind: input, shape index: {}]   ;;  %s870_s3 = inlined_call_operand.hbm [shape: f32[1,3], index: 3, kind: output, shape index: {0}]   ;;  %s871_s4 = inlined_call_operand.hbm [shape: f32[1,1], index: 4, kind: output, shape index: {1}]  }
   0x1   :  { %v78_v1 = vld [vmem:[%s868_s1 + $0x80] sm:$0xff]  ;;  %v79_v2 = vld [vmem:[%s868_s1 + $0x88] sm:$0xff]  ;;  %v80_v15 = vld [vmem:[%s868_s1 + $0x90] sm:$0xff] }
   0x2   :  { %v18_v3 = vld [vmem:[%s867_s0] sm:$0xf]  ;;  %v446_v4 = vpack.c.bf16 %v79_v2, %v78_v1  ;;  %v111_v6 = vld [vmem:[%s868_s1 + $0x188] sm:$0xff]  ;;  %v632_v8 = vshrl.u32 %v20_v0, 7  ;;  %v81_v16 = vld [vmem:[%s868_s1 + $0x98] sm:$0xff] }
   0x3   :  { %v110_v5 = vld [vmem:[%s868_s1 + $0x180] sm:$0xff]  ;;  %v63_v10 = vld [vmem:[%s868_s1 + $0x8] sm:$0xff]  ;;  %v112_v17 = vld [vmem:[%s868_s1 + $0x190] sm:$0xff]  ;;  %v450_v24 = vpack.c.bf16 %v81_v16, %v80_v15 }
   0x4   :  { %v62_v7 = vld [vmem:[%s868_s1] sm:$0xff]  ;;  %v478_v9 = vpack.c.bf16 %v111_v6, %v110_v5  ;;  %v95_v12 = vld [vmem:[%s868_s1 + $0x108] sm:$0xff]  ;;  %447 = vmatprep.subr.bf16.mxu0 %v446_v4  ;;  %v22_v18 = vsub.s32 0, %v632_v8  ;;  %v26_v19 = vsub.s32 1, %v632_v8  ;;  %v30_v20 = vsub.s32 2, %v632_v8  ;;  %v113_v22 = vld [vmem:[%s868_s1 + $0x198] sm:$0xff] }
   0x5   :  { %v94_v11 = vld [vmem:[%s868_s1 + $0x100] sm:$0xff]  ;;  %v448_v13 = vpack.c.bf16 %v63_v10, %v62_v7  ;;  %v34_v21 = vsub.s32 3, %v632_v8  ;;  %v64_v23 = vld [vmem:[%s868_s1 + $0x10] sm:$0xff]  ;;  %v482_v25 = vpack.c.bf16 %v113_v22, %v112_v17  ;;  %v65_v26 = vld [vmem:[%s868_s1 + $0x18] sm:$0xff] }
   0x6   :  { %v480_v14 = vpack.c.bf16 %v95_v12, %v94_v11  ;;  %479 = vmatprep.subr.bf16.mxu1 %v478_v9  ;;  %v96_v27 = vld [vmem:[%s868_s1 + $0x110] sm:$0xff]  ;;  %v97_v28 = vld [vmem:[%s868_s1 + $0x118] sm:$0xff]  ;;  %v673_v29 = vrot.slane %v18_v3, %v22_v18  ;;  %v675_v30 = vrot.slane %v18_v3, %v26_v19  ;;  %v677_v31 = vrot.slane %v18_v3, %v30_v20  ;;  %v82_v33 = vld [vmem:[%s868_s1 + $0xa0] sm:$0xff] }
   0x7   :  { %449 = vmatpush3.bf16.msra.mxu0 %v448_v13  ;;  %v679_v32 = vrot.slane %v18_v3, %v34_v21  ;;  %v83_v34 = vld [vmem:[%s868_s1 + $0xa8] sm:$0xff]  ;;  %v114_v35 = vld [vmem:[%s868_s1 + $0x1a0] sm:$0xff]  ;;  %v452_v36 = vpack.c.bf16 %v65_v26, %v64_v23  ;;  %v484_v37 = vpack.c.bf16 %v97_v28, %v96_v27  ;;  %v84_v51 = vld [vmem:[%s868_s1 + $0xb0] sm:$0xff] }
   0x8   :  { %481 = vmatpush3.bf16.msra.mxu1 %v480_v14  ;;  %451 = vmatprep.subr.bf16.mxu0 %v450_v24  ;;  %v454_v38 = vpack.c.bf16 %v83_v34, %v82_v33  ;;  %v115_v39 = vld [vmem:[%s868_s1 + $0x1a8] sm:$0xff]  ;;  %v66_v40 = vld [vmem:[%s868_s1 + $0x20] sm:$0xff]  ;;  %v41_v42 = vsel %vm40_vm0, %v673_v29, inf  ;;  %v42_v43 = vsel %vm40_vm0, %v675_v30, inf  ;;  %v43_v44 = vsel %vm40_vm0, %v677_v31, inf  ;;  %v85_v52 = vld [vmem:[%s868_s1 + $0xb8] sm:$0xff] }
   0x9   :  { %483 = vmatprep.subr.bf16.mxu1 %v482_v25  ;;  %v67_v41 = vld [vmem:[%s868_s1 + $0x28] sm:$0xff]  ;;  %v44_v45 = vsel %vm40_vm0, %v679_v32, inf  ;;  %v98_v46 = vld [vmem:[%s868_s1 + $0x120] sm:$0xff]  ;;  %v45_v48 = vmin.f32 %v41_v42, %v42_v43  ;;  %v486_v50 = vpack.c.bf16 %v115_v39, %v114_v35  ;;  %v116_v53 = vld [vmem:[%s868_s1 + $0x1b0] sm:$0xff]  ;;  %v458_v56 = vpack.c.bf16 %v85_v52, %v84_v51 }
   0xa   :  { %v99_v47 = vld [vmem:[%s868_s1 + $0x128] sm:$0xff]  ;;  %v46_v49 = vmin.f32 %v43_v44, %v44_v45  ;;  %v456_v54 = vpack.c.bf16 %v67_v41, %v66_v40  ;;  %v117_v57 = vld [vmem:[%s868_s1 + $0x1b8] sm:$0xff]  ;;  %v68_v58 = vld [vmem:[%s868_s1 + $0x30] sm:$0xff] }
   0xb   :  { %453 = vmatpush3.bf16.msra.mxu0 %v452_v36  ;;  %v488_v55 = vpack.c.bf16 %v99_v47, %v98_v46  ;;  %v69_v59 = vld [vmem:[%s868_s1 + $0x38] sm:$0xff]  ;;  %v490_v61 = vpack.c.bf16 %v117_v57, %v116_v53  ;;  %v100_v62 = vld [vmem:[%s868_s1 + $0x130] sm:$0xff] }
   0xc   :  { %485 = vmatpush3.bf16.msra.mxu1 %v484_v37  ;;  %455 = vmatprep.subr.bf16.mxu0 %v454_v38  ;;  %v47_v60 = vmin.f32 %v45_v48, %v46_v49  ;;  %v101_v63 = vld [vmem:[%s868_s1 + $0x138] sm:$0xff] }
   0xd   :  { %487 = vmatprep.subr.bf16.mxu1 %v486_v50 }
   0xe   :  { %11 = vsyncpa [#allocation5], 0  ;;  %48 = vmin.xlane.f32.xlu0 %v47_v60  ;;  %v460_v0 = vpack.c.bf16 %v69_v59, %v68_v58  ;;  %v492_v1 = vpack.c.bf16 %v101_v63, %v100_v62  ;;  %v86_v2 = vld [vmem:[%s868_s1 + $0xc0] sm:$0xff]  ;;  %v87_v3 = vld [vmem:[%s868_s1 + $0xc8] sm:$0xff]  ;;  %s583_s12 = smov 125   ;;  %s584_s13 = smov 104  }
   0xf   :  { %457 = vmatpush3.bf16.msra.mxu0 %v456_v54  ;;  %v118_v4 = vld [vmem:[%s868_s1 + $0x1c0] sm:$0xff]  ;;  %v462_v5 = vpack.c.bf16 %v87_v3, %v86_v2  ;;  %v119_v6 = vld [vmem:[%s868_s1 + $0x1c8] sm:$0xff]  ;;  %v88_v15 = vld [vmem:[%s868_s1 + $0xd0] sm:$0xff]  ;;  %vm334_vm1 = vcmask 188416   ;;  %s585_s14 = smov 127   ;;  %s587_s15 = smov [#allocation2]  }
  0x10   :  { %489 = vmatpush3.bf16.msra.mxu1 %v488_v55  ;;  %459 = vmatprep.subr.bf16.mxu0 %v458_v56  ;;  %v70_v7 = vld [vmem:[%s868_s1 + $0x40] sm:$0xff]  ;;  %v71_v9 = vld [vmem:[%s868_s1 + $0x48] sm:$0xff]  ;;  %v494_v10 = vpack.c.bf16 %v119_v6, %v118_v4  ;;  %v89_v16 = vld [vmem:[%s868_s1 + $0xd8] sm:$0xff]  ;;  %s354_s16 = sshll.u32 %s587_s15, 4  ;;  %vm342_vm2 = vcmask 16384   ;;  %s355_s16 = int_to_ptr.vmem [resolvable:$true] %s354_s16 }
  0x11   :  { %491 = vmatprep.subr.bf16.mxu1 %v490_v61  ;;  %v464_v11 = vpack.c.bf16 %v71_v9, %v70_v7  ;;  %v102_v12 = vld [vmem:[%s868_s1 + $0x140] sm:$0xff]  ;;  %v103_v13 = vld [vmem:[%s868_s1 + $0x148] sm:$0xff]  ;;  %v120_v17 = vld [vmem:[%s868_s1 + $0x1d0] sm:$0xff]  ;;  %v466_v19 = vpack.c.bf16 %v89_v16, %v88_v15  ;;  %s532_s17 = scalar_lea.vmem %s355_s16, 16  ;;  %s536_s18 = scalar_lea.vmem %s355_s16, 32 }
  0x12   :  { %v496_v14 = vpack.c.bf16 %v103_v13, %v102_v12  ;;  %v121_v20 = vld [vmem:[%s868_s1 + $0x1d8] sm:$0xff]  ;;  %v72_v21 = vld [vmem:[%s868_s1 + $0x50] sm:$0xff]  ;;  %v90_v28 = vld [vmem:[%s868_s1 + $0xe0] sm:$0xff]  ;;  %p533_p0 = scmp.ne.s32.totalorder %s355_s16, %s532_s17  ;;  %p537_p1 = scmp.lt.s32.totalorder %s355_s16, %s355_s16 }
  0x13   :  { %461 = vmatpush3.bf16.msra.mxu0 %v460_v0  ;;  %v73_v22 = vld [vmem:[%s868_s1 + $0x58] sm:$0xff]  ;;  %v498_v23 = vpack.c.bf16 %v121_v20, %v120_v17  ;;  %v104_v25 = vld [vmem:[%s868_s1 + $0x150] sm:$0xff]  ;;  %v91_v33 = vld [vmem:[%s868_s1 + $0xe8] sm:$0xff]  ;;  %p538_p2 = scmp.lt.s32.totalorder %s536_s18, %s532_s17 }
  0x14   :  { %493 = vmatpush3.bf16.msra.mxu1 %v492_v1  ;;  %463 = vmatprep.subr.bf16.mxu0 %v462_v5  ;;  %v468_v24 = vpack.c.bf16 %v73_v22, %v72_v21  ;;  %v105_v26 = vld [vmem:[%s868_s1 + $0x158] sm:$0xff]  ;;  %v122_v34 = vld [vmem:[%s868_s1 + $0x1e0] sm:$0xff]  ;;  %v470_v35 = vpack.c.bf16 %v91_v33, %v90_v28  ;;  %v123_v36 = vld [vmem:[%s868_s1 + $0x1e8] sm:$0xff] }
  0x15   :  { %495 = vmatprep.subr.bf16.mxu1 %v494_v10  ;;  %v500_v27 = vpack.c.bf16 %v105_v26, %v104_v25  ;;  %v74_v37 = vld [vmem:[%s868_s1 + $0x60] sm:$0xff]  ;;  %v75_v38 = vld [vmem:[%s868_s1 + $0x68] sm:$0xff]  ;;  %v502_v39 = vpack.c.bf16 %v123_v36, %v122_v34  ;;  %v92_v43 = vld [vmem:[%s868_s1 + $0xf0] sm:$0xff]  ;;  %p539_p3 = por %p538_p2, %p537_p1 }
  0x16   :  { %v472_v40 = vpack.c.bf16 %v75_v38, %v74_v37  ;;  %v106_v41 = vld [vmem:[%s868_s1 + $0x160] sm:$0xff]  ;;  %v107_v42 = vld [vmem:[%s868_s1 + $0x168] sm:$0xff]  ;;  %v93_v45 = vld [vmem:[%s868_s1 + $0xf8] sm:$0xff] }
  0x17   :  { %465 = vmatpush3.bf16.msra.mxu0 %v464_v11  ;;  %v504_v44 = vpack.c.bf16 %v107_v42, %v106_v41  ;;  %v124_v46 = vld [vmem:[%s868_s1 + $0x1f0] sm:$0xff]  ;;  %v125_v47 = vld [vmem:[%s868_s1 + $0x1f8] sm:$0xff]  ;;  %v474_v48 = vpack.c.bf16 %v93_v45, %v92_v43  ;;  %p540_p4 = pnand %p539_p3, %p533_p0 }
  0x18   :  { %497 = vmatpush3.bf16.msra.mxu1 %v496_v14  ;;  %467 = vmatprep.subr.bf16.mxu0 %v466_v19  ;;  %v506_v49 = vpack.c.bf16 %v125_v47, %v124_v46  ;;  %v76_v50 = vld [vmem:[%s868_s1 + $0x70] sm:$0xff]  ;;  %v77_v51 = vld [vmem:[%s868_s1 + $0x78] sm:$0xff]  ;;  %v581_v14 = vmov 1966171168  }
  0x19   :  { %499 = vmatprep.subr.bf16.mxu1 %v498_v23  ;;  %v108_v52 = vld [vmem:[%s868_s1 + $0x170] sm:$0xff]  ;;  %v476_v53 = vpack.c.bf16 %v77_v51, %v76_v50  ;;  %v109_v54 = vld [vmem:[%s868_s1 + $0x178] sm:$0xff]  ;;  %v276_v15 = vunpack.c.l.s4 %v581_v14  ;;  %s582_s1 = smov 3   ;;  %v273_v23 = vld [vmem:[%s869_s2] sm:$0x1]  ;;  %s586_s2 = smov 126  }
  0x1a   :  { %v508_v55 = vpack.c.bf16 %v109_v54, %v108_v52 }
  0x1b   :  { %469 = vmatpush3.bf16.msra.mxu0 %v468_v24  ;;  %v277_v16 = vunpack.c.0.s8 %v276_v15 }
  0x1c   :  { %501 = vmatpush3.bf16.msra.mxu1 %v500_v27  ;;  %471 = vmatprep.subr.bf16.mxu0 %v470_v35 }
  0x1d   :  { %503 = vmatprep.subr.bf16.mxu1 %v502_v39  ;;  %v280_v19 = vsub.s32 %v277_v16, %v632_v8 }
  0x1f   :  { %473 = vmatpush3.bf16.msra.mxu0 %v472_v40 }
  0x20   :  { %505 = vmatpush3.bf16.msra.mxu1 %v504_v44  ;;  %475 = vmatprep.subr.bf16.mxu0 %v474_v48 }
  0x21   :  { %507 = vmatprep.subr.bf16.mxu1 %v506_v49 }
  0x23   :  { %477 = vmatpush3.bf16.msra.mxu0 %v476_v53 }
  0x24   :  { %509 = vmatpush3.bf16.msra.mxu1 %v508_v55 }
  0x9b   :  { %v49_v56 = vpop.xlane.xlu0 %48 }
  0x9c   :  { %v50_v57 = vsub.f32 %v49_v56, %v673_v29  ;;  %v52_v58 = vsub.f32 %v49_v56, %v677_v31  ;;  %v51_v59 = vsub.f32 %v49_v56, %v675_v30  ;;  %v53_v60 = vsub.f32 %v49_v56, %v679_v32 }
  0x9d   :  { %v580_v29 = vmov 27  }
  0x9e   :  { %v54_v61 = vmul.f32 1.442695, %v50_v57  ;;  %v58_v62 = vmul.f32 1.442695, %v52_v58  ;;  %v56_v63 = vmul.f32 1.442695, %v51_v59  ;;  %519 = vset.pattern.permute.xlu0 %v580_v29 }
  0x9f   :  { %v60_v0 = vmul.f32 1.442695, %v53_v60 }
  0xa0   :  { %520 = vpow2.f32 %v54_v61 }
  0xa1   :  { %522 = vpow2.f32 %v58_v62 }
  0xa2   :  { %524 = vpow2.f32 %v56_v63 }
  0xa3   :  { %526 = vpow2.f32 %v60_v0 }
  0xaa   :  { %v521_v1 = vpop.eup %520 }
  0xab   :  { %v523_v2 = vpop.eup %522 }
  0xac   :  { %v525_v3 = vpop.eup %524 }
  0xad   :  { %v527_v4 = vpop.eup %526  ;;  %190 = vmatprep.mubr.f32.mxu0 %v525_v3 }
  0xae   :  { %260 = vmatprep.mubr.f32.mxu1 %v527_v4  ;;  %191 = vmatmul.mubr.f32.vlgmr.msra.gmra.mrb[0].mxu0 %v521_v1 }
  0xaf   :  { %261 = vmatmul.mubr.f32.vlgmr.msra.gmra.mrb[0].mxu1 %v523_v2 }
 0x181   :  { %v408_v30 = vpop.f32.mrb[0].mxu0 }
 0x182   :  { %v443_v31 = vpop.f32.mrb[0].mxu1  ;;  %v409_v32 = vpop.f32.mrb[1].mxu0 }
 0x183   :  { %v410_v5 = vadd.f32 %v409_v32, %v408_v30  ;;  %v444_v6 = vpop.f32.mrb[1].mxu1 }
 0x184   :  { %v445_v7 = vadd.f32 %v444_v6, %v443_v31 }
 0x186   :  { %v263_v9 = vadd.f32 %v445_v7, %v410_v5 }
 0x188   :  { %528 = vrcp.f32 %v263_v9 }
 0x192   :  { %v529_v10 = vpop.eup %528 }
 0x193   :  { %269 = vperm.xlu0 %519, %v529_v10  }
 0x212   :  { %v270_v11 = vpop.permute.xlu0 %269 }
 0x213   :  { %v272_v12 = vmul.f32 %v270_v11, %v263_v9 }
 0x215   :  { %v304_v13 = vmax.f32 %v272_v12, 1e-08  ;;  %v281_v26 = vrot.slane %v272_v12, %v280_v19 }
 0x217   :  { %530 = vlog2.f32 %v304_v13  ;;  %v288_v28 = vrot.slane %v281_v26, %v280_v19 }
 0x221   :  { %v531_v17 = vpop.eup %530 }
 0x222   :  { %v306_v20 = vmul.f32 0.6931472, %v531_v17 }
 0x224   :  { %v314_v21 = vrot.slane %v306_v20, %v280_v19 }
 0x226   :  { %v321_v22 = vrot.slane %v314_v21, %v280_v19 }
 0x228   :  { %322 = vrot.lane.b32.xlu1 %v321_v22, %s582_s1 }
 0x29a   :  { %v323_v24 = vpop.permute.xlu1 %322 }
 0x29b   :  { %v325_v25 = vmul.f32 %v323_v24, %v273_v23 }
 0x29d   :  { %v330_v27 = vrot.slane %v325_v25, %v22_v18 }
 0x29f   :  { %331 = vrot.lane.b32.xlu1 %v330_v27, %s583_s12 }
 0x2a3   :  { %289 = vrot.lane.b32.xlu1 %v288_v28, %s584_s13 }
 0x311   :  { %v332_v33 = vpop.permute.xlu1 %331 }
 0x312   :  { %v335_v34 = vsel %vm334_vm1, %v332_v33, 0.0 }
 0x313   :  { %336 = vadd.xlane.f32.xlu1 %v335_v34 }
 0x315   :  { %v290_v35 = vpop.permute.xlu1 %289 }
 0x316   :  { %v292_v36 = vsub.f32 %v273_v23, %v290_v35 }
 0x318   :  { %v293_v37 = vmul.f32 %v292_v36, %v292_v36 }
 0x31a   :  { %295 = vrot.lane.b32.xlu0 %v293_v37, %s585_s14 }
 0x31e   :  { %339 = vrot.lane.b32.xlu0 %v272_v12, %s584_s13 }
 0x324   :  { %300 = vrot.lane.b32.xlu1 %v293_v37, %s586_s2 }
 0x38c   :  { %v296_v38 = vpop.permute.xlu0 %295 }
 0x390   :  { %v340_v8 = vpop.permute.xlu0 %339 }
 0x391   :  { %343 = vst.msk [vmem:[#allocation2] sm:$0x1] %vm342_vm2, %v340_v8 }
 0x392   :  { %543 = shalt.err (!%p540_p4)
}
 0x393   :  { %s544_s21 = scalar_lea.hbm %s870_s3, 16 }
 0x394   :  { %p545_p5 = scmp.ne.s32.totalorder %s870_s3, %s544_s21  ;;  %p548_p6 = scmp.lt.u32.totalorder %s544_s21, %s870_s3 }
 0x396   :  { %p550_p7 = pnand %p548_p6, %p545_p5 }
 0x398   :  { %553 = shalt.err (!%p550_p7)
}
 0x399   :  { %357 = dma.vmem_to_hbm [thread:$0]  %s355_s16, 16, %s870_s3, [#allocation3]   ;;  %v298_v18 = vadd.f32 %v296_v38, %v293_v37  ;;  %vm346_vm3 = vcmask 0  }
 0x39a   :  { %s588_s28 = smov [#allocation4]  }
 0x39b   :  { %v299_v41 = vmul.f32 1.5, %v298_v18  ;;  %s364_s0 = sshll.u32 %s588_s28, 4  ;;  %s365_s0 = int_to_ptr.vmem [resolvable:$true] %s364_s0 }
 0x39c   :  { %s554_s29 = scalar_lea.vmem %s365_s0, 16  ;;  %s558_s30 = scalar_lea.vmem %s365_s0, 32 }
 0x39d   :  { %p555_p8 = scmp.ne.s32.totalorder %s365_s0, %s554_s29  ;;  %p559_p9 = scmp.lt.s32.totalorder %s365_s0, %s365_s0 }
 0x39e   :  { %p560_p10 = scmp.lt.s32.totalorder %s558_s30, %s554_s29 }
 0x3a0   :  { %v337_v39 = vpop.xlane.xlu1 %336  ;;  %p561_p11 = por %p560_p10, %p559_p9 }
 0x3a1   :  { %v338_v40 = vsub.f32 0.0, %v337_v39 }
 0x3a2   :  { %p562_p12 = pnand %p561_p11, %p555_p8 }
 0x3a3   :  { %v344_v43 = vmul.f32 0.5, %v338_v40 }
 0x3a4   :  { %v301_v42 = vpop.permute.xlu1 %300 }
 0x3a5   :  { %v303_v44 = vadd.f32 %v301_v42, %v299_v41 }
 0x3a7   :  { %v345_v45 = vadd.f32 %v344_v43, %v303_v44 }
 0x3a9   :  { %347 = vst.msk [vmem:[#allocation4] sm:$0x1] %vm346_vm3, %v345_v45 }
 0x3aa   :  { %565 = shalt.err (!%p562_p12)
}
 0x3ab   :  { %s566_s6 = scalar_lea.hbm %s871_s4, 16 }
 0x3ac   :  { %p567_p13 = scmp.ne.s32.totalorder %s871_s4, %s566_s6  ;;  %p570_p0 = scmp.lt.u32.totalorder %s566_s6, %s871_s4 }
 0x3ae   :  { %p572_p1 = pnand %p570_p0, %p567_p13 }
 0x3b0   :  { %575 = shalt.err (!%p572_p1)
}
 0x3b1   :  { %367 = dma.vmem_to_hbm [thread:$0]  %s365_s0, 16, %s871_s4, [#allocation5]  }
 0x3b2   :  { %576 = dma.done.wait [#allocation3], 16  }
 0x3b3   :  { %577 = vsyncadd [#allocation3], 4294967280 }
 0x3b4   :  { %578 = dma.done.wait [#allocation5], 16  }
 0x3b5   :  { %579 = vsyncadd [#allocation5], 4294967280 }
 0x3b6   :  { %374 = vsyncpa [#allocation3], 1 }
 0x3b7   :  { %375 = vsyncpa [#allocation5], 1 }

</bundles_post_ra>
